<compile_context>
chip_gen: v6e
topology: v6e:2x2x1
jax: 0.10.0
libtpu: 0.0.40
codegen_flags: <defaults>
</compile_context>

<pallas_src>
import functools

import jax
import jax.numpy as jnp
import numpy as np
from jax.experimental import pallas as pl
from jax.experimental.pallas import tpu as pltpu


def _round_up(x, m):
    return (x + m - 1) // m * m


# ---------------------------------------------------------------------------
# Fused path: one grid step per batch element, whole (C, M) slab in VMEM.
# Reads X once, writes the output once (optimal HBM traffic for this op).
# ---------------------------------------------------------------------------
def _se_fused_kernel(x_ref, w1_ref, w2_ref, o_ref, *, inv_hw):
    x = x_ref[0].astype(jnp.float32)                         # (C, M)
    avg = jnp.sum(x, axis=1, keepdims=True) * inv_hw         # (C, 1)
    # h[j] = relu( sum_c avg[c] * W1[c, j] )                 -> (1, hidden)
    h = jnp.maximum(jnp.sum(w1_ref[...] * avg, axis=0, keepdims=True), 0.0)
    # s[c] = sigmoid( sum_j h[j] * W2t[c, j] )               -> (C, 1)
    s = jnp.sum(w2_ref[...] * h, axis=1, keepdims=True)
    s = 1.0 / (1.0 + jnp.exp(-s))                            # sigmoid (EUP)
    o_ref[0] = (x * s).astype(o_ref.dtype)                   # lane broadcast


# ---------------------------------------------------------------------------
# Fallback pass 1: spatial-sum accumulation + squeeze/excite FC + sigmoid.
# ---------------------------------------------------------------------------
def _se_reduce_fc_kernel(x_ref, w1_ref, w2_ref, s_ref, acc_ref, *, inv_hw):
    m = pl.program_id(1)

    @pl.when(m == 0)
    def _():
        acc_ref[...] = jnp.zeros_like(acc_ref)

    # x_ref: (1, C, tile_m); lane-reduce over the spatial tile.
    acc_ref[...] += jnp.sum(x_ref[0].astype(jnp.float32), axis=1, keepdims=True)

    @pl.when(m == pl.num_programs(1) - 1)
    def _():
        avg = acc_ref[...] * inv_hw                                     # (C, 1)
        h = jnp.maximum(jnp.sum(w1_ref[...] * avg, axis=0, keepdims=True), 0.0)
        s = jnp.sum(w2_ref[...] * h, axis=1, keepdims=True)             # (C, 1)
        s_ref[0] = 1.0 / (1.0 + jnp.exp(-s))


# ---------------------------------------------------------------------------
# Fallback pass 2: broadcast the per-channel gate over the spatial tiles.
# ---------------------------------------------------------------------------
def _se_scale_kernel(x_ref, s_ref, o_ref):
    # (1, C, tile_m) * (1, C, 1)  -> broadcast along lanes.
    o_ref[...] = (x_ref[...].astype(jnp.float32) * s_ref[...]).astype(o_ref.dtype)


def senet_forward(x_nchw, w1, w2, *, fused_slab_bytes=3 << 20, tile_bytes=2 << 20):
    """SE block forward in NCHW.

    w1: (C, C//ratio) == torch fc1.weight.T  (so h = avg @ w1)
    w2: (C//ratio, C) == torch fc2.weight.T  (so s = h @ w2)
    """
    B, C, H, W = x_nchw.shape
    hidden = w1.shape[1]
    assert w1.shape == (C, hidden) and w2.shape == (hidden, C)

    M = H * W
    x = x_nchw.reshape(B, C, M)                  # free view; stays NCHW
    w1_ch = w1.astype(jnp.float32)               # (C, hidden)
    w2_ch = w2.T.astype(jnp.float32)             # (C, hidden)
    inv_hw = 1.0 / float(M)
    itemsize = jnp.dtype(x.dtype).itemsize
    vmem = dict(vmem_limit_bytes=32 * 1024 * 1024)

    # ---------------- fused single-pass path (CIFAR-scale shapes) ----------
    if C * M * itemsize <= fused_slab_bytes:
        out = pl.pallas_call(
            functools.partial(_se_fused_kernel, inv_hw=inv_hw),
            grid=(B,),
            in_specs=[
                pl.BlockSpec((1, C, M), lambda b: (b, 0, 0)),
                pl.BlockSpec((C, hidden), lambda b: (0, 0)),
                pl.BlockSpec((C, hidden), lambda b: (0, 0)),
            ],
            out_specs=pl.BlockSpec((1, C, M), lambda b: (b, 0, 0)),
            out_shape=jax.ShapeDtypeStruct((B, C, M), x.dtype),
            compiler_params=pltpu.CompilerParams(
                dimension_semantics=("parallel",), **vmem),
        )(x, w1_ch, w2_ch)
        return out.reshape(B, C, H, W)

    # ---------------- general fallback: tile the spatial dim ---------------
    tile_m = min(_round_up(M, 128),
                 max(128, (tile_bytes // (C * itemsize)) // 128 * 128))
    Mp = _round_up(M, tile_m)
    n_mt = Mp // tile_m
    xp = x if Mp == M else jnp.pad(x, ((0, 0), (0, 0), (0, Mp - M)))

    scale = pl.pallas_call(
        functools.partial(_se_reduce_fc_kernel, inv_hw=inv_hw),
        grid=(B, n_mt),
        in_specs=[
            pl.BlockSpec((1, C, tile_m), lambda b, m: (b, 0, m)),
            pl.BlockSpec((C, hidden), lambda b, m: (0, 0)),
            pl.BlockSpec((C, hidden), lambda b, m: (0, 0)),
        ],
        out_specs=pl.BlockSpec((1, C, 1), lambda b, m: (b, 0, 0)),
        out_shape=jax.ShapeDtypeStruct((B, C, 1), jnp.float32),
        scratch_shapes=[pltpu.VMEM((C, 1), jnp.float32)],
        compiler_params=pltpu.CompilerParams(
            dimension_semantics=("parallel", "arbitrary"), **vmem),
    )(xp, w1_ch, w2_ch)

    outp = pl.pallas_call(
        _se_scale_kernel,
        grid=(B, n_mt),
        in_specs=[
            pl.BlockSpec((1, C, tile_m), lambda b, m: (b, 0, m)),
            pl.BlockSpec((1, C, 1), lambda b, m: (b, 0, 0)),
        ],
        out_specs=pl.BlockSpec((1, C, tile_m), lambda b, m: (b, 0, m)),
        out_shape=jax.ShapeDtypeStruct((B, C, Mp), x.dtype),
        compiler_params=pltpu.CompilerParams(
            dimension_semantics=("parallel", "parallel"), **vmem),
    )(xp, scale)
    return outp[:, :, :M].reshape(B, C, H, W)


# ---------------- pure-JAX reference (for correctness check) ----------------
def reference_forward(x_nchw, w1, w2):
    avg = x_nchw.astype(jnp.float32).mean(axis=(2, 3))      # (B, C)
    h = jax.nn.relu(avg @ w1)
    s = jax.nn.sigmoid(h @ w2)
    return x_nchw * s[:, :, None, None]


if __name__ == "__main__":
    key = jax.random.PRNGKey(0)
    B, C, H, W = 2, 64, 16, 16          # channel=64, ratio=16 -> hidden=4
    ratio = 16
    hidden = C // ratio

    k0, k1, k2 = jax.random.split(key, 3)
    x = jax.random.normal(k0, (B, C, H, W), jnp.float32)
    # PyTorch Linear(channel, channel//ratio, bias=False).weight is (hidden, C);
    # we hold its transpose so y = x @ w1 matches x @ weight.T.  Same for w2.
    w1 = 0.2 * jax.random.normal(k1, (C, hidden), jnp.float32)
    w2 = 0.2 * jax.random.normal(k2, (hidden, C), jnp.float32)

    fwd = jax.jit(senet_forward)
    out = jax.block_until_ready(fwd(x, w1, w2))

    ref = reference_forward(x, w1, w2)
    np.testing.assert_allclose(np.asarray(out), np.asarray(ref),
                               atol=1e-4, rtol=1e-4)
    print("KERNEL_OK")
</pallas_src>

<mosaic_0001>
module attributes {stable_mosaic.version = 11 : i64} {
  func.func @_se_fused_kernel(%arg0: i32, %arg1: memref<1x64x256xf32, #tpu.memory_space<vmem>>, %arg2: memref<64x4xf32, #tpu.memory_space<vmem>>, %arg3: memref<64x4xf32, #tpu.memory_space<vmem>>, %arg4: memref<1x64x256xf32, #tpu.memory_space<vmem>>) attributes {dimension_semantics = [#tpu.dimension_semantics<parallel>], iteration_bounds = array<i64: 2>, scalar_prefetch = 0 : i64, scratch_operands = 0 : i64, tpu.core_type = #tpu.core_type<tc>, window_params = [{transform_indices = @transform_0, window_bounds = array<i64: 1, 64, 256>}, {pipeline_mode = #tpu.pipeline_mode<synchronous>, transform_indices = @transform_1, window_bounds = array<i64: 64, 4>}, {pipeline_mode = #tpu.pipeline_mode<synchronous>, transform_indices = @transform_2, window_bounds = array<i64: 64, 4>}, {transform_indices = @transform_3, window_bounds = array<i64: 1, 64, 256>}]} {
    %c0 = arith.constant 0 : index
    %c0_0 = arith.constant 0 : index
    %c0_1 = arith.constant 0 : index
    %0 = vector.load %arg1[%c0, %c0_0, %c0_1] : memref<1x64x256xf32, #tpu.memory_space<vmem>>, vector<1x64x256xf32>
    %1 = vector.shape_cast %0 : vector<1x64x256xf32> to vector<64x256xf32>
    %cst = arith.constant dense<0.000000e+00> : vector<64xf32>
    %2 = vector.multi_reduction <add>, %1, %cst [1] : vector<64x256xf32> to vector<64xf32>
    %3 = vector.shape_cast %2 : vector<64xf32> to vector<64x1xf32>
    %cst_2 = arith.constant 3.906250e-03 : f32
    %4 = vector.broadcast %cst_2 : f32 to vector<64x1xf32>
    %5 = arith.mulf %3, %4 : vector<64x1xf32>
    %c0_3 = arith.constant 0 : index
    %c0_4 = arith.constant 0 : index
    %6 = vector.load %arg2[%c0_3, %c0_4] : memref<64x4xf32, #tpu.memory_space<vmem>>, vector<64x4xf32>
    %7 = vector.broadcast %5 : vector<64x1xf32> to vector<64x4xf32>
    %8 = arith.mulf %6, %7 : vector<64x4xf32>
    %cst_5 = arith.constant dense<0.000000e+00> : vector<4xf32>
    %9 = vector.multi_reduction <add>, %8, %cst_5 [0] : vector<64x4xf32> to vector<4xf32>
    %10 = vector.shape_cast %9 : vector<4xf32> to vector<1x4xf32>
    %cst_6 = arith.constant 0.000000e+00 : f32
    %11 = vector.broadcast %cst_6 : f32 to vector<1x4xf32>
    %12 = arith.maximumf %10, %11 : vector<1x4xf32>
    %c0_7 = arith.constant 0 : index
    %c0_8 = arith.constant 0 : index
    %13 = vector.load %arg3[%c0_7, %c0_8] : memref<64x4xf32, #tpu.memory_space<vmem>>, vector<64x4xf32>
    %14 = vector.broadcast %12 : vector<1x4xf32> to vector<64x4xf32>
    %15 = arith.mulf %13, %14 : vector<64x4xf32>
    %cst_9 = arith.constant dense<0.000000e+00> : vector<64xf32>
    %16 = vector.multi_reduction <add>, %15, %cst_9 [1] : vector<64x4xf32> to vector<64xf32>
    %17 = vector.shape_cast %16 : vector<64xf32> to vector<64x1xf32>
    %cst_10 = arith.constant 0.000000e+00 : f32
    %18 = vector.broadcast %cst_10 : f32 to vector<64x1xf32>
    %19 = arith.subf %18, %17 : vector<64x1xf32>
    %20 = math.exp %19 : vector<64x1xf32>
    %cst_11 = arith.constant 1.000000e+00 : f32
    %21 = vector.broadcast %cst_11 : f32 to vector<64x1xf32>
    %22 = arith.addf %21, %20 : vector<64x1xf32>
    %cst_12 = arith.constant 1.000000e+00 : f32
    %23 = vector.broadcast %cst_12 : f32 to vector<64x1xf32>
    %24 = arith.divf %23, %22 : vector<64x1xf32>
    %25 = vector.broadcast %24 : vector<64x1xf32> to vector<64x256xf32>
    %26 = arith.mulf %1, %25 : vector<64x256xf32>
    %c0_13 = arith.constant 0 : index
    %c0_14 = arith.constant 0 : index
    %c0_15 = arith.constant 0 : index
    %27 = vector.load %arg4[%c0_13, %c0_14, %c0_15] : memref<1x64x256xf32, #tpu.memory_space<vmem>>, vector<1x64x256xf32>
    %28 = vector.shape_cast %27 : vector<1x64x256xf32> to vector<64x256xf32>
    %29 = vector.shape_cast %26 : vector<64x256xf32> to vector<1x64x256xf32>
    tpu.vector_store %arg4[%c0_13, %c0_14, %c0_15], %29 {strides = array<i32>} : memref<1x64x256xf32, #tpu.memory_space<vmem>>, vector<1x64x256xf32>,
    return
  }
  func.func @transform_0(%arg0: i32) -> (i32, i32, i32) {
    %c0_i32 = arith.constant 0 : i32
    %c0_i32_0 = arith.constant 0 : i32
    %c0_i32_1 = arith.constant 0 : i32
    return %arg0, %c0_i32, %c0_i32_0 : i32, i32, i32
  }
  func.func @transform_1(%arg0: i32) -> (i32, i32) {
    %c0_i32 = arith.constant 0 : i32
    %c0_i32_0 = arith.constant 0 : i32
    %c0_i32_1 = arith.constant 0 : i32
    return %c0_i32, %c0_i32_0 : i32, i32
  }
  func.func @transform_2(%arg0: i32) -> (i32, i32) {
    %c0_i32 = arith.constant 0 : i32
    %c0_i32_0 = arith.constant 0 : i32
    %c0_i32_1 = arith.constant 0 : i32
    return %c0_i32, %c0_i32_0 : i32, i32
  }
  func.func @transform_3(%arg0: i32) -> (i32, i32, i32) {
    %c0_i32 = arith.constant 0 : i32
    %c0_i32_0 = arith.constant 0 : i32
    %c0_i32_1 = arith.constant 0 : i32
    return %arg0, %c0_i32, %c0_i32_0 : i32, i32, i32
  }
}

</mosaic_0001>

<bundles_post_ra>
// kernel: senet_forward.1
= control target key start
LH: loop header
LB: loop body
LE: loop exit
PB: predicated region body
PF: predicated region fallthrough
CT: control target
= control target key end

     0   :  { %s514_s12 = smov 0   ;;  %s684_s0 = inlined_call_operand.vmem [shape: f32[2,64,256], index: 0, kind: input, shape index: {}]   ;;  %s685_s1 = inlined_call_operand.vmem [shape: f32[64,4], index: 1, kind: input, shape index: {}]   ;;  %s686_s2 = inlined_call_operand.vmem [shape: f32[64,4], index: 2, kind: input, shape index: {}]   ;;  %s687_s3 = inlined_call_operand.vmem [shape: f32[2,64,256], index: 3, kind: output, shape index: {}]  }
   0x1 LB: > { %s433_s13 = sadd.s32 4294967295, %s492_s12   ;;  %p437_p0 = scmp.ge.s32.totalorder %s492_s12, 1  ;;  %s492_s12 = sphi %s514_s12, %s13_s12  }
   0x2   : > { %p137_p1 = scmp.lt.s32.totalorder %s492_s12, 3 }
   0x4   : > { %p138_p2 = pnand %p437_p0, %p137_p1 }
   0x5   : > { %p161_p3 = scmp.lt.s32.totalorder (!%p138_p2), %s433_s13, 1 }
   0x6   : > { %141 = sbr.rel (%p138_p2) target bundleno = 383 (0x17f), region = 32 }
   0xb   : > { %s689_s13 = smov (!%p161_p3, %s433_s13), 1  ;;  %v219_v27 = vld [vmem:[%s685_s1] sm:$0xff]  ;;  %v221_v29 = vld [vmem:[%s685_s1 + $0x10] sm:$0xff]  ;;  %v220_v30 = vld [vmem:[%s685_s1 + $0x8] sm:$0xff]  ;;  %vm235_vm0 = vcmask 31744  }
   0xc   : > { %s444_s14 = sshll.u32 %s689_s13, 7  ;;  %v222_v34 = vld [vmem:[%s685_s1 + $0x18] sm:$0xff]  ;;  %v223_v40 = vld [vmem:[%s685_s1 + $0x20] sm:$0xff]  ;;  %v224_v45 = vld [vmem:[%s685_s1 + $0x28] sm:$0xff] }
   0xd   : > { %s165_s17 = scalar_lea.vmem %s684_s0, %s444_s14  ;;  %v225_v54 = vld [vmem:[%s685_s1 + $0x30] sm:$0xff]  ;;  %v226_v58 = vld [vmem:[%s685_s1 + $0x38] sm:$0xff]  ;;  %s647_s28 = scalar_lea.vmem %s687_s3, %s444_s14 }
   0xe   : > { %v530_v0 = vld [vmem:[%s165_s17] sm:$0xff]  ;;  %v532_v1 = vld [vmem:[%s165_s17 + $0x8] sm:$0xff]  ;;  %v540_v5 = vld [vmem:[%s165_s17 + $0x10] sm:$0xff] }
   0xf   : > { %v534_v2 = vld [vmem:[%s165_s17 + $0x20] sm:$0xff]  ;;  %v187_v3 = vadd.f32 %v532_v1, %v530_v0  ;;  %v538_v4 = vld [vmem:[%s165_s17 + $0x28] sm:$0xff]  ;;  %v542_v6 = vld [vmem:[%s165_s17 + $0x18] sm:$0xff] }
  0x10   : > { %v193_v7 = vadd.f32 %v538_v4, %v534_v2  ;;  %v546_v8 = vld [vmem:[%s165_s17 + $0x30] sm:$0xff]  ;;  %v548_v9 = vld [vmem:[%s165_s17 + $0x38] sm:$0xff]  ;;  %v190_v10 = vadd.f32 %v542_v6, %v540_v5  ;;  %v554_v12 = vld [vmem:[%s165_s17 + $0x40] sm:$0xff] }
  0x11   : > { %188 = vadd.xlane.f32.xlu0 %v187_v3  ;;  %v196_v11 = vadd.f32 %v548_v9, %v546_v8  ;;  %v556_v13 = vld [vmem:[%s165_s17 + $0x48] sm:$0xff]  ;;  %v558_v14 = vld [vmem:[%s165_s17 + $0x50] sm:$0xff]  ;;  %v560_v15 = vld [vmem:[%s165_s17 + $0x58] sm:$0xff] }
  0x12   : > { %194 = vadd.xlane.f32.xlu1 %v193_v7  ;;  %v199_v16 = vadd.f32 %v556_v13, %v554_v12  ;;  %v202_v17 = vadd.f32 %v560_v15, %v558_v14  ;;  %v566_v18 = vld [vmem:[%s165_s17 + $0x60] sm:$0xff]  ;;  %v568_v19 = vld [vmem:[%s165_s17 + $0x68] sm:$0xff]  ;;  %v570_v20 = vld [vmem:[%s165_s17 + $0x70] sm:$0xff] }
  0x13   : > { %v572_v21 = vld [vmem:[%s165_s17 + $0x78] sm:$0xff]  ;;  %v205_v22 = vadd.f32 %v568_v19, %v566_v18 }
  0x14   : > { %v208_v23 = vadd.f32 %v572_v21, %v570_v20 }
  0x15   : > { %191 = vadd.xlane.f32.xlu0 %v190_v10 }
  0x16   : > { %197 = vadd.xlane.f32.xlu1 %v196_v11 }
  0x19   : > { %200 = vadd.xlane.f32.xlu0 %v199_v16 }
  0x1a   : > { %203 = vadd.xlane.f32.xlu1 %v202_v17 }
  0x1d   : > { %206 = vadd.xlane.f32.xlu0 %v205_v22 }
  0x1e   : > { %209 = vadd.xlane.f32.xlu1 %v208_v23 }
  0x9a   : > { %v189_v24 = vpop.xlane.xlu0 %188 }
  0x9b   : > { %v211_v25 = vmul.f32 0.00390625, %v189_v24  ;;  %v195_v26 = vpop.xlane.xlu1 %194 }
  0x9c   : > { %v213_v28 = vmul.f32 0.00390625, %v195_v26 }
  0x9d   : > { %v227_v32 = vmul.f32 %v219_v27, %v211_v25 }
  0x9e   : > { %v192_v31 = vpop.xlane.xlu0 %191  ;;  %v229_v37 = vmul.f32 %v221_v29, %v213_v28  ;;  %v259_v29 = vld [vmem:[%s686_s2 + $0x8] sm:$0xff] }
  0x9f   : > { %v212_v33 = vmul.f32 0.00390625, %v192_v31  ;;  %v198_v35 = vpop.xlane.xlu1 %197  ;;  %v236_v42 = vsel %vm235_vm0, %v227_v32, 0.0  ;;  %v261_v32 = vld [vmem:[%s686_s2 + $0x18] sm:$0xff] }
  0xa0   : > { %v214_v36 = vmul.f32 0.00390625, %v198_v35  ;;  %v239_v49 = vsel %vm235_vm0, %v229_v37, 0.0 }
  0xa1   : > { %v228_v38 = vmul.f32 %v220_v30, %v212_v33  ;;  %v258_v30 = vld [vmem:[%s686_s2] sm:$0xff]  ;;  %v260_v33 = vld [vmem:[%s686_s2 + $0x10] sm:$0xff] }
  0xa2   : > { %v230_v39 = vmul.f32 %v222_v34, %v214_v36  ;;  %v201_v41 = vpop.xlane.xlu0 %200 }
  0xa3   : > { %v237_v43 = vsel %vm235_vm0, %v228_v38, 0.0  ;;  %v215_v44 = vmul.f32 0.00390625, %v201_v41  ;;  %v204_v46 = vpop.xlane.xlu1 %203  ;;  %v262_v41 = vld [vmem:[%s686_s2 + $0x20] sm:$0xff] }
  0xa4   : > { %v238_v47 = vadd.f32 %v237_v43, %v236_v42  ;;  %v216_v48 = vmul.f32 0.00390625, %v204_v46  ;;  %v241_v50 = vsel %vm235_vm0, %v230_v39, 0.0  ;;  %v265_v46 = vld [vmem:[%s686_s2 + $0x38] sm:$0xff] }
  0xa5   : > { %v231_v51 = vmul.f32 %v223_v40, %v215_v44  ;;  %v263_v40 = vld [vmem:[%s686_s2 + $0x28] sm:$0xff] }
  0xa6   : > { %v240_v52 = vadd.f32 %v239_v49, %v238_v47  ;;  %v232_v53 = vmul.f32 %v224_v45, %v216_v48  ;;  %v207_v55 = vpop.xlane.xlu0 %206  ;;  %v264_v47 = vld [vmem:[%s686_s2 + $0x30] sm:$0xff] }
  0xa7   : > { %v243_v56 = vsel %vm235_vm0, %v231_v51, 0.0  ;;  %v217_v57 = vmul.f32 0.00390625, %v207_v55  ;;  %v210_v59 = vpop.xlane.xlu1 %209 }
  0xa8   : > { %v242_v60 = vadd.f32 %v241_v50, %v240_v52  ;;  %v218_v61 = vmul.f32 0.00390625, %v210_v59  ;;  %v245_v62 = vsel %vm235_vm0, %v232_v53, 0.0 }
  0xa9   : > { %v233_v63 = vmul.f32 %v225_v54, %v217_v57 }
  0xaa   : > { %v244_v3 = vadd.f32 %v243_v56, %v242_v60  ;;  %v234_v7 = vmul.f32 %v226_v58, %v218_v61 }
  0xab   : > { %v247_v10 = vsel %vm235_vm0, %v233_v63, 0.0 }
  0xac   : > { %v246_v11 = vadd.f32 %v245_v62, %v244_v3  ;;  %v249_v16 = vsel %vm235_vm0, %v234_v7, 0.0 }
  0xae   : > { %v248_v17 = vadd.f32 %v247_v10, %v246_v11 }
  0xb0   : > { %v250_v22 = vadd.f32 %v249_v16, %v248_v17 }
  0xb2   : > { %v251_v23 = vrot.slane %v250_v22, 4 }
  0xb4   : > { %v252_v24 = vadd.f32 %v251_v23, %v250_v22 }
  0xb6   : > { %v253_v25 = vrot.slane %v252_v24, 2 }
  0xb8   : > { %v254_v26 = vadd.f32 %v253_v25, %v252_v24 }
  0xba   : > { %v255_v27 = vrot.slane %v254_v26, 1 }
  0xbc   : > { %v256_v28 = vadd.f32 %v255_v27, %v254_v26 }
  0xbe   : > { %v257_v31 = vmax.f32 %v256_v28, 0.0 }
  0xc0   : > { %v267_v34 = vmul.f32 %v259_v29, %v257_v31  ;;  %v266_v35 = vmul.f32 %v258_v30, %v257_v31  ;;  %v269_v38 = vmul.f32 %v261_v32, %v257_v31  ;;  %v268_v39 = vmul.f32 %v260_v33, %v257_v31 }
  0xc1   : > { %v271_v44 = vmul.f32 %v263_v40, %v257_v31  ;;  %v270_v45 = vmul.f32 %v262_v41, %v257_v31  ;;  %v273_v50 = vmul.f32 %v265_v46, %v257_v31  ;;  %v272_v51 = vmul.f32 %v264_v47, %v257_v31 }
  0xc2   : > { %v277_v36 = vsel %vm235_vm0, %v267_v34, 0.0  ;;  %v274_v37 = vsel %vm235_vm0, %v266_v35, 0.0  ;;  %v283_v42 = vsel %vm235_vm0, %v269_v38, 0.0  ;;  %v280_v43 = vsel %vm235_vm0, %v268_v39, 0.0 }
  0xc3   : > { %278 = vadd.xlane.f32.xlu1 %v277_v36  ;;  %275 = vadd.xlane.f32.xlu0 %v274_v37  ;;  %v289_v48 = vsel %vm235_vm0, %v271_v44, 0.0  ;;  %v286_v49 = vsel %vm235_vm0, %v270_v45, 0.0  ;;  %v295_v52 = vsel %vm235_vm0, %v273_v50, 0.0  ;;  %v292_v53 = vsel %vm235_vm0, %v272_v51, 0.0 }
  0xc7   : > { %284 = vadd.xlane.f32.xlu1 %v283_v42  ;;  %281 = vadd.xlane.f32.xlu0 %v280_v43 }
  0xcb   : > { %290 = vadd.xlane.f32.xlu1 %v289_v48  ;;  %287 = vadd.xlane.f32.xlu0 %v286_v49 }
  0xcf   : > { %296 = vadd.xlane.f32.xlu1 %v295_v52  ;;  %293 = vadd.xlane.f32.xlu0 %v292_v53 }
 0x14c   : > { %v279_v54 = vpop.xlane.xlu1 %278  ;;  %v276_v55 = vpop.xlane.xlu0 %275 }
 0x14d   : > { %v299_v56 = vsub.f32 0.0, %v279_v54  ;;  %v298_v57 = vsub.f32 0.0, %v276_v55 }
 0x14f   : > { %v308_v58 = vmul.f32 1.442695, %v299_v56  ;;  %v306_v59 = vmul.f32 1.442695, %v298_v57 }
 0x150   : > { %v285_v60 = vpop.xlane.xlu1 %284  ;;  %v282_v61 = vpop.xlane.xlu0 %281 }
 0x151   : > { %454 = vpow2.f32 %v308_v58  ;;  %v301_v62 = vsub.f32 0.0, %v285_v60  ;;  %v300_v63 = vsub.f32 0.0, %v282_v61 }
 0x152   : > { %456 = vpow2.f32 %v306_v59 }
 0x153   : > { %v312_v3 = vmul.f32 1.442695, %v301_v62  ;;  %v310_v7 = vmul.f32 1.442695, %v300_v63 }
 0x154   : > { %v291_v10 = vpop.xlane.xlu1 %290  ;;  %v288_v11 = vpop.xlane.xlu0 %287 }
 0x155   : > { %458 = vpow2.f32 %v312_v3  ;;  %v303_v16 = vsub.f32 0.0, %v291_v10  ;;  %v302_v17 = vsub.f32 0.0, %v288_v11 }
 0x156   : > { %460 = vpow2.f32 %v310_v7 }
 0x157   : > { %v316_v22 = vmul.f32 1.442695, %v303_v16  ;;  %v314_v23 = vmul.f32 1.442695, %v302_v17 }
 0x158   : > { %v297_v24 = vpop.xlane.xlu1 %296  ;;  %v294_v25 = vpop.xlane.xlu0 %293 }
 0x159   : > { %462 = vpow2.f32 %v316_v22  ;;  %v305_v26 = vsub.f32 0.0, %v297_v24  ;;  %v304_v27 = vsub.f32 0.0, %v294_v25 }
 0x15a   : > { %464 = vpow2.f32 %v314_v23 }
 0x15b   : > { %v320_v28 = vmul.f32 1.442695, %v305_v26  ;;  %v318_v29 = vmul.f32 1.442695, %v304_v27 }
 0x15d   : > { %466 = vpow2.f32 %v320_v28 }
 0x15e   : > { %v455_v30 = vpop.eup %454  ;;  %468 = vpow2.f32 %v318_v29 }
 0x15f   : > { %v457_v31 = vpop.eup %456  ;;  %v323_v32 = vadd.f32 1.0, %v455_v30 }
 0x160   : > { %v322_v33 = vadd.f32 1.0, %v457_v31 }
 0x161   : > { %470 = vrcp.f32 %v323_v32 }
 0x162   : > { %v459_v34 = vpop.eup %458  ;;  %472 = vrcp.f32 %v322_v33 }
 0x163   : > { %v461_v35 = vpop.eup %460  ;;  %v325_v36 = vadd.f32 1.0, %v459_v34 }
 0x164   : > { %v324_v37 = vadd.f32 1.0, %v461_v35 }
 0x165   : > { %474 = vrcp.f32 %v325_v36 }
 0x166   : > { %v463_v38 = vpop.eup %462  ;;  %476 = vrcp.f32 %v324_v37 }
 0x167   : > { %v465_v39 = vpop.eup %464  ;;  %v327_v40 = vadd.f32 1.0, %v463_v38 }
 0x168   : > { %v326_v41 = vadd.f32 1.0, %v465_v39 }
 0x169   : > { %478 = vrcp.f32 %v327_v40 }
 0x16a   : > { %v467_v42 = vpop.eup %466  ;;  %480 = vrcp.f32 %v326_v41 }
 0x16b   : > { %v469_v43 = vpop.eup %468  ;;  %v329_v44 = vadd.f32 1.0, %v467_v42 }
 0x16c   : > { %v328_v45 = vadd.f32 1.0, %v469_v43 }
 0x16d   : > { %482 = vrcp.f32 %v329_v44 }
 0x16e   : > { %v471_v46 = vpop.eup %470  ;;  %484 = vrcp.f32 %v328_v45 }
 0x16f   : > { %v473_v47 = vpop.eup %472  ;;  %v348_v48 = vmul.f32 %v471_v46, %v540_v5  ;;  %v349_v49 = vmul.f32 %v471_v46, %v542_v6 }
 0x170   : > { %v346_v50 = vmul.f32 %v473_v47, %v530_v0  ;;  %v347_v51 = vmul.f32 %v473_v47, %v532_v1 }
 0x171   : > { %364 = vst [vmem:[%s647_s28 + $0x10] sm:$0xff] %v348_v48  ;;  %365 = vst [vmem:[%s647_s28 + $0x18] sm:$0xff] %v349_v49 }
 0x172   : > { %v475_v52 = vpop.eup %474  ;;  %362 = vst [vmem:[%s647_s28] sm:$0xff] %v346_v50  ;;  %363 = vst [vmem:[%s647_s28 + $0x8] sm:$0xff] %v347_v51 }
 0x173   : > { %v477_v53 = vpop.eup %476  ;;  %v352_v54 = vmul.f32 %v475_v52, %v546_v8  ;;  %v353_v5 = vmul.f32 %v475_v52, %v548_v9 }
 0x174   : > { %v350_v6 = vmul.f32 %v477_v53, %v534_v2  ;;  %v351_v0 = vmul.f32 %v477_v53, %v538_v4 }
 0x175   : > { %368 = vst [vmem:[%s647_s28 + $0x30] sm:$0xff] %v352_v54  ;;  %369 = vst [vmem:[%s647_s28 + $0x38] sm:$0xff] %v353_v5 }
 0x176   : > { %v479_v1 = vpop.eup %478  ;;  %366 = vst [vmem:[%s647_s28 + $0x20] sm:$0xff] %v350_v6  ;;  %367 = vst [vmem:[%s647_s28 + $0x28] sm:$0xff] %v351_v0 }
 0x177   : > { %v481_v55 = vpop.eup %480  ;;  %v356_v56 = vmul.f32 %v479_v1, %v558_v14  ;;  %v357_v8 = vmul.f32 %v479_v1, %v560_v15 }
 0x178   : > { %v354_v9 = vmul.f32 %v481_v55, %v554_v12  ;;  %v355_v2 = vmul.f32 %v481_v55, %v556_v13 }
 0x179   : > { %372 = vst [vmem:[%s647_s28 + $0x50] sm:$0xff] %v356_v56  ;;  %373 = vst [vmem:[%s647_s28 + $0x58] sm:$0xff] %v357_v8 }
 0x17a   : > { %v483_v4 = vpop.eup %482  ;;  %370 = vst [vmem:[%s647_s28 + $0x40] sm:$0xff] %v354_v9  ;;  %371 = vst [vmem:[%s647_s28 + $0x48] sm:$0xff] %v355_v2 }
 0x17b   : > { %v485_v57 = vpop.eup %484  ;;  %v360_v58 = vmul.f32 %v483_v4, %v570_v20  ;;  %v361_v59 = vmul.f32 %v483_v4, %v572_v21 }
 0x17c   : > { %v358_v14 = vmul.f32 %v485_v57, %v566_v18  ;;  %v359_v60 = vmul.f32 %v485_v57, %v568_v19 }
 0x17d   : > { %376 = vst [vmem:[%s647_s28 + $0x70] sm:$0xff] %v360_v58  ;;  %377 = vst [vmem:[%s647_s28 + $0x78] sm:$0xff] %v361_v59 }
 0x17e   : > { %374 = vst [vmem:[%s647_s28 + $0x60] sm:$0xff] %v358_v14  ;;  %375 = vst [vmem:[%s647_s28 + $0x68] sm:$0xff] %v359_v60 }
 0x17f PF: > { %s13_s12 = sadd.s32 1, %s492_s12  }
 0x180   : > { %p10_p4 = scmp.ge.s32.totalorder %s13_s12, 4  }
 0x182   :  { %12 = sbr.rel (!%p10_p4) target bundleno = 1 (0x1), region = 62 }

</bundles_post_ra>
